<compile_context>
chip_gen: v6e
topology: v6e:2x2x1
jax: 0.10.0
libtpu: 0.0.40
codegen_flags: <defaults>
</compile_context>

<pallas_src>
import functools

import jax
import jax.numpy as jnp
from jax import lax
from jax.experimental import pallas as pl

BN_EPS = 1e-6  # matches the module: nn.BatchNorm1d(dim_hidden, eps=1e-06)


def mlp_kernel(x_ref, w1_ref, params_ref, w2_ref, o_ref, *, mxu_dtype):
    n = x_ref.shape[0]
    d_hid = w1_ref.shape[1]
    d_out = w2_ref.shape[1]

    # --- Linear 1 on the MXU.  b1 intentionally omitted: it is cancelled exactly
    #     by the BatchNorm mean subtraction (dead work removed).
    x = x_ref[...].astype(mxu_dtype)
    w1 = w1_ref[...].astype(mxu_dtype)
    h = jnp.dot(x, w1, preferred_element_type=jnp.float32)        # (n, d_hid) f32

    # --- Packed per-feature params: row 0 = gamma, row 1 = beta, row 2 = b2.
    params = params_ref[...]                                       # (8, lanes) f32
    gamma = params[0:1, :d_hid]
    beta = params[1:2, :d_hid]
    b2 = params[2:3, :d_out]

    # --- BatchNorm1d (training-mode forward: batch statistics, biased variance),
    #     folded into a single per-feature scale/shift.
    inv_n = 1.0 / n
    s = jnp.sum(h, axis=0, keepdims=True)                          # independent XLU reduce
    ss = jnp.sum(h * h, axis=0, keepdims=True)                     # independent XLU reduce
    mean = s * inv_n
    var = ss * inv_n - mean * mean
    scale = gamma * lax.rsqrt(var + BN_EPS)                        # rsqrt -> EUP slot
    shift = beta - mean * scale

    # --- ReLU; Dropout = identity (eval semantics).
    # TODO(synk): stochastic training-mode dropout (p=0.1) not reproduced — PyTorch's
    #             RNG stream cannot be matched; kernel applies identity instead.
    h_act = jnp.maximum(h * scale + shift, 0.0)

    # --- Linear 2 on the MXU.
    out = jnp.dot(h_act.astype(mxu_dtype), w2_ref[...].astype(mxu_dtype),
                  preferred_element_type=jnp.float32) + b2
    # NOTE: d_out=16 < 128 lanes -> single masked vst here; pad to 128 if scaled up.
    o_ref[...] = out.astype(o_ref.dtype)


def mlp_forward(x, w1, b1, gamma, beta, w2, b2, *, mxu_dtype=jnp.float32):
    """b1 is accepted for interface parity with the PyTorch module but is never
    DMA'd or used: training-mode BatchNorm cancels it exactly."""
    del b1
    n, d_in = x.shape
    d_hid = w1.shape[1]
    d_out = w2.shape[1]

    # Pack the small per-feature vectors into ONE (8, 128k) f32 tile so a single DMA
    # feeds the kernel; each separate (1, D) input would pad to its own (8,128) tile.
    lanes = 128 * pl.cdiv(max(d_hid, d_out), 128)
    packed = jnp.zeros((8, lanes), jnp.float32)
    packed = packed.at[0, :d_hid].set(gamma.reshape(-1).astype(jnp.float32))
    packed = packed.at[1, :d_hid].set(beta.reshape(-1).astype(jnp.float32))
    packed = packed.at[2, :d_out].set(b2.reshape(-1).astype(jnp.float32))

    full = lambda shape: pl.BlockSpec(shape, lambda: tuple(0 for _ in shape))

    return pl.pallas_call(
        functools.partial(mlp_kernel, mxu_dtype=mxu_dtype),
        out_shape=jax.ShapeDtypeStruct((n, d_out), jnp.float32),
        grid=(),
        in_specs=[
            full((n, d_in)),
            full((d_in, d_hid)),
            full((8, lanes)),
            full((d_hid, d_out)),
        ],
        out_specs=full((n, d_out)),
    )(x, w1, packed, w2)


def mlp_reference(x, w1, b1, gamma, beta, w2, b2):
    """PyTorch-faithful reference (keeps b1) — verifies the b1-cancellation claim."""
    h = x @ w1 + b1
    mean = jnp.mean(h, axis=0, keepdims=True)
    var = jnp.mean((h - mean) ** 2, axis=0, keepdims=True)
    h_hat = (h - mean) / jnp.sqrt(var + BN_EPS) * gamma + beta
    h_act = jnp.maximum(h_hat, 0.0)
    return h_act @ w2 + b2


def init_params(key, d_in, d_hid, d_out):
    """Deterministic init mimicking PyTorch Linear defaults (uniform +/- 1/sqrt(fan_in))."""
    k1, k2, k3, k4 = jax.random.split(key, 4)
    bound1 = 1.0 / jnp.sqrt(d_in)
    bound2 = 1.0 / jnp.sqrt(d_hid)
    w1 = jax.random.uniform(k1, (d_in, d_hid), jnp.float32, -bound1, bound1)
    b1 = jax.random.uniform(k2, (1, d_hid), jnp.float32, -bound1, bound1)
    gamma = jnp.ones((1, d_hid), jnp.float32)   # BatchNorm1d weight init
    beta = jnp.zeros((1, d_hid), jnp.float32)   # BatchNorm1d bias init
    w2 = jax.random.uniform(k3, (d_hid, d_out), jnp.float32, -bound2, bound2)
    b2 = jax.random.uniform(k4, (1, d_out), jnp.float32, -bound2, bound2)
    return w1, b1, gamma, beta, w2, b2


if __name__ == "__main__":
    N, D_IN, D_HID, D_OUT = 8, 32, 64, 16

    key = jax.random.PRNGKey(0)
    kx, kp = jax.random.split(key)
    x = jax.random.normal(kx, (N, D_IN), jnp.float32)
    params = init_params(kp, D_IN, D_HID, D_OUT)

    # f32 MXU inputs at these tiny shapes (exact match to the f32 module); on v6e/v7x
    # at real batch sizes pass mxu_dtype=jnp.bfloat16.
    out = mlp_forward(x, *params)
    out = jax.block_until_ready(out)

    ref = mlp_reference(x, *params)
    assert out.shape == (N, D_OUT)
    assert jnp.allclose(out, ref, atol=1e-4, rtol=1e-4), "mismatch vs JAX reference"

    print("KERNEL_OK")
</pallas_src>

<mosaic_0001>
module attributes {stable_mosaic.version = 11 : i64} {
  func.func @mlp_kernel(%arg0: memref<8x32xf32, #tpu.memory_space<vmem>>, %arg1: memref<32x64xf32, #tpu.memory_space<vmem>>, %arg2: memref<8x128xf32, #tpu.memory_space<vmem>>, %arg3: memref<64x16xf32, #tpu.memory_space<vmem>>, %arg4: memref<8x16xf32, #tpu.memory_space<vmem>>) attributes {dimension_semantics = [], scalar_prefetch = 0 : i64, scratch_operands = 0 : i64, tpu.core_type = #tpu.core_type<tc>} {
    %c0 = arith.constant 0 : index
    %c0_0 = arith.constant 0 : index
    %0 = vector.load %arg0[%c0, %c0_0] : memref<8x32xf32, #tpu.memory_space<vmem>>, vector<8x32xf32>
    %c0_1 = arith.constant 0 : index
    %c0_2 = arith.constant 0 : index
    %1 = vector.load %arg1[%c0_1, %c0_2] : memref<32x64xf32, #tpu.memory_space<vmem>>, vector<32x64xf32>
    %cst = arith.constant dense<0.000000e+00> : vector<8x64xf32>
    %2 = tpu.matmul %0, %1, %cst {dimension_numbers = #tpu.dot_dimension_numbers<[1], [0], [0], [1], [0, 0, 1, 1], [], []>} : vector<8x32xf32>, vector<32x64xf32>, vector<8x64xf32> -> vector<8x64xf32>
    %c0_3 = arith.constant 0 : index
    %c0_4 = arith.constant 0 : index
    %3 = vector.load %arg2[%c0_3, %c0_4] : memref<8x128xf32, #tpu.memory_space<vmem>>, vector<8x128xf32>
    %4 = vector.extract_strided_slice %3 {offsets = [0, 0], sizes = [1, 64], strides = [1, 1]} : vector<8x128xf32> to vector<1x64xf32>
    %5 = vector.extract_strided_slice %3 {offsets = [1, 0], sizes = [1, 64], strides = [1, 1]} : vector<8x128xf32> to vector<1x64xf32>
    %6 = vector.extract_strided_slice %3 {offsets = [2, 0], sizes = [1, 16], strides = [1, 1]} : vector<8x128xf32> to vector<1x16xf32>
    %cst_5 = arith.constant dense<0.000000e+00> : vector<64xf32>
    %7 = vector.multi_reduction <add>, %2, %cst_5 [0] : vector<8x64xf32> to vector<64xf32>
    %8 = vector.shape_cast %7 : vector<64xf32> to vector<1x64xf32>
    %9 = arith.mulf %2, %2 : vector<8x64xf32>
    %cst_6 = arith.constant dense<0.000000e+00> : vector<64xf32>
    %10 = vector.multi_reduction <add>, %9, %cst_6 [0] : vector<8x64xf32> to vector<64xf32>
    %11 = vector.shape_cast %10 : vector<64xf32> to vector<1x64xf32>
    %cst_7 = arith.constant 1.250000e-01 : f32
    %12 = vector.broadcast %cst_7 : f32 to vector<1x64xf32>
    %13 = arith.mulf %8, %12 : vector<1x64xf32>
    %cst_8 = arith.constant 1.250000e-01 : f32
    %14 = vector.broadcast %cst_8 : f32 to vector<1x64xf32>
    %15 = arith.mulf %11, %14 : vector<1x64xf32>
    %16 = arith.mulf %13, %13 : vector<1x64xf32>
    %17 = arith.subf %15, %16 : vector<1x64xf32>
    %cst_9 = arith.constant 9.99999997E-7 : f32
    %18 = vector.broadcast %cst_9 : f32 to vector<1x64xf32>
    %19 = arith.addf %17, %18 : vector<1x64xf32>
    %20 = math.rsqrt %19 : vector<1x64xf32>
    %21 = arith.mulf %4, %20 : vector<1x64xf32>
    %22 = arith.mulf %13, %21 : vector<1x64xf32>
    %23 = arith.subf %5, %22 : vector<1x64xf32>
    %24 = vector.broadcast %21 : vector<1x64xf32> to vector<8x64xf32>
    %25 = arith.mulf %2, %24 : vector<8x64xf32>
    %26 = vector.broadcast %23 : vector<1x64xf32> to vector<8x64xf32>
    %27 = arith.addf %25, %26 : vector<8x64xf32>
    %cst_10 = arith.constant 0.000000e+00 : f32
    %28 = vector.broadcast %cst_10 : f32 to vector<8x64xf32>
    %29 = arith.maximumf %27, %28 : vector<8x64xf32>
    %c0_11 = arith.constant 0 : index
    %c0_12 = arith.constant 0 : index
    %30 = vector.load %arg3[%c0_11, %c0_12] : memref<64x16xf32, #tpu.memory_space<vmem>>, vector<64x16xf32>
    %cst_13 = arith.constant dense<0.000000e+00> : vector<8x16xf32>
    %31 = tpu.matmul %29, %30, %cst_13 {dimension_numbers = #tpu.dot_dimension_numbers<[1], [0], [0], [1], [0, 0, 1, 1], [], []>} : vector<8x64xf32>, vector<64x16xf32>, vector<8x16xf32> -> vector<8x16xf32>
    %32 = vector.broadcast %6 : vector<1x16xf32> to vector<8x16xf32>
    %33 = arith.addf %31, %32 : vector<8x16xf32>
    %c0_14 = arith.constant 0 : index
    %c0_15 = arith.constant 0 : index
    %34 = vector.load %arg4[%c0_14, %c0_15] : memref<8x16xf32, #tpu.memory_space<vmem>>, vector<8x16xf32>
    tpu.vector_store %arg4[%c0_14, %c0_15], %33 {strides = array<i32>} : memref<8x16xf32, #tpu.memory_space<vmem>>, vector<8x16xf32>,
    return
  }
}

</mosaic_0001>

<bundles_post_ra>
// kernel: tpu_custom_call.1
= control target key start
LH: loop header
LB: loop body
LE: loop exit
PB: predicated region body
PF: predicated region fallthrough
CT: control target
= control target key end

     0   :  { %v311_v1 = vmov 0.0   ;;  %vm312_vm0 = vmmov 0   ;;  %s387_s0 = inlined_call_operand.vmem [shape: f32[8,32], index: 0, kind: input, shape index: {}]   ;;  %s388_s1 = inlined_call_operand.vmem [shape: f32[32,64], index: 1, kind: input, shape index: {}]   ;;  %s389_s2 = inlined_call_operand.vmem [shape: f32[8,128], index: 2, kind: input, shape index: {}]   ;;  %s390_s3 = inlined_call_operand.vmem [shape: f32[64,16], index: 3, kind: input, shape index: {}]   ;;  %s391_s4 = inlined_call_operand.hbm [shape: f32[8,16], index: 4, kind: output, shape index: {}]  }
   0x1   :  { %v22_v0 = vld [vmem:[%s388_s1 + $0x18] sm:$0xff]  ;;  %254 = vmatprep.subr.mxu0 %v311_v1  ;;  %v21_v2 = vld [vmem:[%s388_s1 + $0x10] sm:$0xff]  ;;  %262 = vmatprep.mubr.msk.f32.mxu0 %vm312_vm0, %v311_v1 }
   0x2   :  { %9 = vsyncpa [#allocation3], 0  ;;  %255 = vmatpush3.msra.mxu0 %v22_v0  ;;  %265 = vmatprep.subr.mxu1 %v311_v1  ;;  %v20_v3 = vld [vmem:[%s388_s1 + $0x8] sm:$0xff]  ;;  %v19_v4 = vld [vmem:[%s388_s1] sm:$0xff]  ;;  %vm23_vm1 = vcmask 261120   ;;  %vm98_vm2 = vcmask 523264   ;;  %v126_v36 = vlaneseq }
   0x3   :  { %256 = vmatprep.subr.mxu0 %v311_v1  ;;  %281 = vmatprep.mubr.msk.f32.mxu1 %vm312_vm0, %v311_v1  ;;  %v18_v5 = vld [vmem:[%s387_s0] sm:$0xff]  ;;  %v144_v6 = vld [vmem:[%s390_s3 + $0x38] sm:$0xff]  ;;  %v143_v7 = vld [vmem:[%s390_s3 + $0x30] sm:$0xff]  ;;  %s313_s14 = smov [#allocation2]   ;;  %vm222_vm3 = vcmask 130048  }
   0x4   :  { %257 = vmatpush3.msra.mxu0 %v21_v2  ;;  %266 = vmatpush3.msra.mxu1 %v144_v6  ;;  %v142_v8 = vld [vmem:[%s390_s3 + $0x28] sm:$0xff]  ;;  %v141_v9 = vld [vmem:[%s390_s3 + $0x20] sm:$0xff]  ;;  %v140_v10 = vld [vmem:[%s390_s3 + $0x18] sm:$0xff]  ;;  %v127_v37 = vshrl.u32 %v126_v36, 7  ;;  %s230_s15 = sshll.u32 %s313_s14, 4  ;;  %s231_s15 = int_to_ptr.vmem [resolvable:$true] %s230_s15 }
   0x5   :  { %258 = vmatprep.subr.mxu0 %v311_v1  ;;  %267 = vmatprep.subr.mxu1 %v311_v1  ;;  %v139_v11 = vld [vmem:[%s390_s3 + $0x10] sm:$0xff]  ;;  %v138_v12 = vld [vmem:[%s390_s3 + $0x8] sm:$0xff]  ;;  %v137_v13 = vld [vmem:[%s390_s3] sm:$0xff]  ;;  %p294_p1 = scmp.lt.s32.totalorder %s231_s15, %s231_s15 }
   0x6   :  { %259 = vmatpush3.msra.mxu0 %v20_v3  ;;  %268 = vmatpush3.msra.mxu1 %v143_v7  ;;  %v97_v38 = vld [vmem:[%s389_s2] sm:$0xff]  ;;  %v128_v41 = vsub.s32 0, %v127_v37  ;;  %v133_v45 = vsub.s32 1, %v127_v37  ;;  %v147_v51 = vsub.s32 2, %v127_v37  ;;  %s289_s2 = scalar_lea.vmem %s231_s15, 128 }
   0x7   :  { %260 = vmatprep.subr.mxu0 %v311_v1  ;;  %269 = vmatprep.subr.mxu1 %v311_v1  ;;  %p290_p0 = scmp.ne.s32.totalorder %s231_s15, %s289_s2  ;;  %p295_p2 = scmp.lt.s32.totalorder %s289_s2, %s289_s2 }
   0x8   :  { %261 = vmatpush3.msra.mxu0 %v19_v4  ;;  %270 = vmatpush3.msra.mxu1 %v142_v8  ;;  %v148_v52 = vrot.slane %v97_v38, %v147_v51 }
   0x9   :  { %263 = vmatmul.mubr.msk.f32.vlgmr.msra.gmra.mxu0 %vm23_vm1, %v18_v5  ;;  %271 = vmatprep.subr.mxu1 %v311_v1  ;;  %p296_p3 = por %p295_p2, %p294_p1 }
   0xa   :  { %272 = vmatpush3.msra.mxu1 %v141_v9 }
   0xb   :  { %273 = vmatprep.subr.mxu1 %v311_v1  ;;  %p297_p4 = pnand %p296_p3, %p290_p0 }
   0xc   :  { %274 = vmatpush3.msra.mxu1 %v140_v10 }
   0xd   :  { %275 = vmatprep.subr.mxu1 %v311_v1 }
   0xe   :  { %276 = vmatpush3.msra.mxu1 %v139_v11 }
   0xf   :  { %277 = vmatprep.subr.mxu1 %v311_v1 }
  0x10   :  { %278 = vmatpush3.msra.mxu1 %v138_v12 }
  0x11   :  { %279 = vmatprep.subr.mxu1 %v311_v1 }
  0x12   :  { %280 = vmatpush3.msra.mxu1 %v137_v13 }
  0xc9   :  { %v93_v14 = vpop.f32.mrf.mxu0 }
  0xca   :  { %v99_v15 = vsel %vm98_vm2, %v93_v14, 0.0  ;;  %v106_v16 = vmul.f32 %v93_v14, %v93_v14 }
  0xcb   :  { %v100_v17 = vrot.slane %v99_v15, 4  ;;  %v264_v18 = vpop.f32.mrf.mxu0 }
  0xcc   :  { %v107_v19 = vsel %vm98_vm2, %v106_v16, 0.0 }
  0xcd   :  { %v101_v20 = vadd.f32 %v100_v17, %v99_v15  ;;  %v108_v21 = vrot.slane %v107_v19, 4 }
  0xcf   :  { %v102_v22 = vrot.slane %v101_v20, 2  ;;  %v109_v23 = vadd.f32 %v108_v21, %v107_v19 }
  0xd1   :  { %v103_v24 = vadd.f32 %v102_v22, %v101_v20  ;;  %v110_v25 = vrot.slane %v109_v23, 2 }
  0xd3   :  { %v104_v26 = vrot.slane %v103_v24, 1  ;;  %v111_v27 = vadd.f32 %v110_v25, %v109_v23 }
  0xd5   :  { %v105_v28 = vadd.f32 %v104_v26, %v103_v24  ;;  %v112_v29 = vrot.slane %v111_v27, 1 }
  0xd7   :  { %v113_v30 = vadd.f32 %v112_v29, %v111_v27  ;;  %v114_v31 = vmul.f32 0.125, %v105_v28 }
  0xd9   :  { %v115_v32 = vmul.f32 0.125, %v113_v30  ;;  %v116_v33 = vmul.f32 %v114_v31, %v114_v31 }
  0xdb   :  { %v117_v34 = vsub.f32 %v115_v32, %v116_v33 }
  0xdd   :  { %v118_v35 = vadd.f32 1e-06, %v117_v34 }
  0xdf   :  { %287 = vrsqrt.f32 %v118_v35 }
  0xec   :  { %v288_v39 = vpop.eup %287 }
  0xed   :  { %v120_v40 = vmul.f32 %v288_v39, %v97_v38 }
  0xef   :  { %v121_v42 = vmul.f32 %v120_v40, %v114_v31  ;;  %v129_v44 = vrot.slane %v120_v40, %v128_v41 }
  0xf1   :  { %v123_v43 = vrot.slane %v121_v42, 7  ;;  %v130_v47 = vmul.f32 %v129_v44, %v93_v14 }
  0xf3   :  { %v125_v46 = vsub.f32 %v97_v38, %v123_v43 }
  0xf5   :  { %v134_v48 = vrot.slane %v125_v46, %v133_v45 }
  0xf7   :  { %v135_v49 = vadd.f32 %v134_v48, %v130_v47 }
  0xf9   :  { %v136_v50 = vmax.f32 %v135_v49, 0.0 }
  0xfb   :  { %282 = vmatmul.mubr.msk.f32.vlgmr.msra.gmra.mxu1 %vm98_vm2, %v136_v50 }
 0x1bb   :  { %v218_v53 = vpop.f32.mrf.mxu1 }
 0x1bc   :  { %v219_v54 = vadd.f32 %v218_v53, %v148_v52 }
 0x1bd   :  { %v283_v55 = vpop.f32.mrf.mxu1 }
 0x1be   :  { %223 = vst.msk [vmem:[#allocation2] sm:$0xff] %vm222_vm3, %v219_v54 }
 0x1bf   :  { %300 = shalt.err (!%p297_p4)
}
 0x1c0   :  { %233 = dma.vmem_to_hbm [thread:$0]  %s231_s15, 128, %s391_s4, [#allocation3]  }
 0x1c1   :  { %309 = dma.done.wait [#allocation3], 128  }
 0x1c2   :  { %310 = vsyncadd [#allocation3], 4294967168 }
 0x1c3   :  { %237 = vsyncpa [#allocation3], 1 }

</bundles_post_ra>
